<compile_context>
chip_gen: v5e
topology: v5e:2x2
jax: 0.10.0
libtpu: 0.0.40
codegen_flags: <defaults>
</compile_context>

<pallas_src>
import jax
import jax.numpy as jnp
from jax.experimental import pallas as pl
from jax.experimental.pallas import tpu as pltpu

EPS = 1e-32      # CWCELoss.epsilon
_LANES = 128
_SUB = 8


def _cwce_kernel(x_ref, lab_ref, pos_ref, neg_ref, cnt_ref):
    # Zero the per-core accumulators at the start of this core's reduction.
    @pl.when(pl.program_id(1) == 0)
    def _init():
        pos_ref[...] = jnp.zeros_like(pos_ref)
        neg_ref[...] = jnp.zeros_like(neg_ref)
        cnt_ref[...] = jnp.zeros_like(cnt_ref)

    x = x_ref[...].astype(jnp.float32)           # (tb, 128) logits
    lab = lab_ref[...].astype(jnp.float32)       # (tb, 128) labels

    s = 1.0 / (1.0 + jnp.exp(-x))                # sigmoid (EUP exp)
    one_m_s = 1.0 - s                            # matches torch's `1 - sigmoid`
    lpos = jnp.log(s + EPS)                      # keep explicit +EPS clamping
    lneg = jnp.log(one_m_s + EPS)

    pos_term = lab * lpos
    neg_term = (1.0 - lab) * lneg

    tb = x.shape[0]

    def part(a):
        # (tb, 128) -> (1, 8, 128): pure VPU adds over the leading axis.
        return jnp.sum(a.reshape(tb // _SUB, _SUB, _LANES), axis=0)[None]

    pos_ref[...] += part(pos_term)
    neg_ref[...] += part(neg_term)
    cnt_ref[...] += part(lab)


def _round_up(x, m):
    return ((x + m - 1) // m) * m


def cwce_loss(output, labels, *, tile_rows=2048, num_core_splits=2):
    """Pallas-TPU forward of CWCELoss. Returns (fpcls, fpcls) as scalars."""
    if labels.ndim == 1:
        labels = labels[:, None]
    B = output.shape[0]
    C_lab = labels.shape[1]
    N = B * C_lab                                 # true element count

    # Keep labels narrow; bool -> bf16 (i1 blocks are finicky, bf16 casts cleanly).
    if labels.dtype == jnp.bool_:
        labels = labels.astype(jnp.bfloat16)

    # Only logit column 0 is ever used -- never DMA the other columns.
    x_col = output[:, 0:1]
    if C_lab > 1:
        x_flat = jnp.broadcast_to(x_col, (B, C_lab)).reshape(-1)
    else:
        x_flat = x_col.reshape(-1)
    lab_flat = labels.reshape(-1)

    cores = max(1, int(num_core_splits))
    rows_needed = -(-N // _LANES)
    tb = min(int(tile_rows), _round_up(-(-rows_needed // cores), _SUB))
    tb = max(_SUB, _round_up(tb, _SUB))
    tiles_per_core = -(-rows_needed // (cores * tb))
    rows_padded = cores * tiles_per_core * tb
    n_padded = rows_padded * _LANES

    # Padding (logit = -30, label = 0) contributes exactly 0 to every sum:
    #   label = 0      -> pos term = 0, pos count = 0
    #   sigmoid(-30) ~ 9e-14  ->  1 - s + eps == 1.0 in f32  ->  log == 0 exactly.
    pad = n_padded - N
    x2 = jnp.pad(x_flat, (0, pad), constant_values=-30.0).reshape(rows_padded, _LANES)
    lab2 = jnp.pad(lab_flat, (0, pad)).reshape(rows_padded, _LANES)

    acc_shape = jax.ShapeDtypeStruct((cores, _SUB, _LANES), jnp.float32)
    acc_spec = pl.BlockSpec((1, _SUB, _LANES), lambda c, i: (c, 0, 0))
    in_spec = pl.BlockSpec((tb, _LANES), lambda c, i: (c * tiles_per_core + i, 0))

    p_pos, p_neg, p_cnt = pl.pallas_call(
        _cwce_kernel,
        out_shape=(acc_shape, acc_shape, acc_shape),
        grid_spec=pltpu.PrefetchScalarGridSpec(
            num_scalar_prefetch=0,
            grid=(cores, tiles_per_core),
            in_specs=[in_spec, in_spec],
            out_specs=[acc_spec, acc_spec, acc_spec],
        ),
        compiler_params=pltpu.CompilerParams(
            dimension_semantics=("parallel", "arbitrary"),
            vmem_limit_bytes=32 * 1024 * 1024,
        ),
    )(x2, lab2)

    # Tiny final combine (3 * cores * 8 * 128 floats) in plain JAX.
    total = jnp.float32(N)
    sum_pos_log = jnp.sum(p_pos)
    sum_neg_log = jnp.sum(p_neg)
    num_pos = jnp.sum(p_cnt)
    num_neg = total - num_pos                     # == (1 - labels).sum()
    beta_p = num_pos / total
    beta_n = num_neg / total
    fpcls = -beta_n * (sum_pos_log / total) - beta_p * (sum_neg_log / total)
    # TODO(synk): the PyTorch `.item()` NaN check + pdb.set_trace() is host-side
    # debugging with no in-kernel equivalent and is not translated.
    return fpcls, fpcls


def _reference(output, labels):
    """Pure-JAX mirror of the PyTorch CWCELoss.forward."""
    if labels.ndim == 1:
        labels = labels[:, None]
    outs = jax.nn.sigmoid(output[:, :1].astype(jnp.float32))
    lab = labels.astype(jnp.float32)
    neg_lab = 1.0 - lab
    neg_outs = 1.0 - outs
    num_neg = neg_lab.sum()
    num_pos = lab.sum()
    beta_p = num_pos / (num_pos + num_neg)
    beta_n = num_neg / (num_pos + num_neg)
    pos_loss = (lab * jnp.log(outs + EPS)).mean()
    neg_loss = (neg_lab * jnp.log(neg_outs + EPS)).mean()
    fpcls = -beta_n * pos_loss - beta_p * neg_loss
    return fpcls, fpcls


if __name__ == "__main__":
    key = jax.random.PRNGKey(0)
    k1, k2, k3, k4, k5, k6 = jax.random.split(key, 6)

    # Case 1: small shapes matching the module: output [B, D], labels [B, 1].
    B, D = 256, 4
    output = 3.0 * jax.random.normal(k1, (B, D), dtype=jnp.float32)
    labels = jax.random.bernoulli(k2, 0.4, (B, 1)).astype(jnp.float32)
    loss_a, loss_b = cwce_loss(output, labels)
    loss_a, loss_b = jax.block_until_ready((loss_a, loss_b))
    ref_a, _ = _reference(output, labels)
    assert bool(jnp.isfinite(loss_a))
    assert jnp.allclose(loss_a, ref_a, rtol=1e-5, atol=1e-6)
    assert jnp.allclose(loss_b, ref_a, rtol=1e-5, atol=1e-6)

    # Case 2: ragged batch, bool 1-D labels, tiny tile -> grid (2, T) with
    # T > 1: exercises padding, cross-tile accumulation and narrow labels.
    B2 = 9000
    output2 = jax.random.normal(k3, (B2, D), dtype=jnp.float32)
    labels2 = jax.random.bernoulli(k4, 0.5, (B2,))
    l2, _ = cwce_loss(output2, labels2, tile_rows=8)
    l2 = jax.block_until_ready(l2)
    r2, _ = _reference(output2, labels2)
    assert jnp.allclose(l2, r2, rtol=1e-5, atol=1e-6)

    # Case 3: multi-column labels (the single logit column broadcasts).
    B3 = 64
    output3 = jax.random.normal(k5, (B3, D), dtype=jnp.float32)
    labels3 = jax.random.bernoulli(k6, 0.3, (B3, 3)).astype(jnp.float32)
    l3, _ = cwce_loss(output3, labels3)
    l3 = jax.block_until_ready(l3)
    r3, _ = _reference(output3, labels3)
    assert jnp.allclose(l3, r3, rtol=1e-5, atol=1e-6)

    print("KERNEL_OK")
</pallas_src>

<mosaic_0001>
module attributes {stable_mosaic.version = 11 : i64} {
  func.func @_cwce_kernel(%arg0: i32, %arg1: i32, %arg2: memref<8x128xf32, #tpu.memory_space<vmem>>, %arg3: memref<8x128xf32, #tpu.memory_space<vmem>>, %arg4: memref<1x8x128xf32, #tpu.memory_space<vmem>>, %arg5: memref<1x8x128xf32, #tpu.memory_space<vmem>>, %arg6: memref<1x8x128xf32, #tpu.memory_space<vmem>>) attributes {dimension_semantics = [#tpu.dimension_semantics<parallel>, #tpu.dimension_semantics<arbitrary>], iteration_bounds = array<i64: 2, 1>, scalar_prefetch = 0 : i64, scratch_operands = 0 : i64, tpu.core_type = #tpu.core_type<tc>, window_params = [{transform_indices = @transform_0, window_bounds = array<i64: 8, 128>}, {transform_indices = @transform_1, window_bounds = array<i64: 8, 128>}, {transform_indices = @transform_2, window_bounds = array<i64: 1, 8, 128>}, {transform_indices = @transform_3, window_bounds = array<i64: 1, 8, 128>}, {transform_indices = @transform_4, window_bounds = array<i64: 1, 8, 128>}]} {
    %c0_i32 = arith.constant 0 : i32
    %0 = arith.cmpi eq, %arg1, %c0_i32 : i32
    %1 = arith.extui %0 : i1 to i32
    %c0_i32_0 = arith.constant 0 : i32
    %2 = arith.cmpi ne, %1, %c0_i32_0 : i32
    scf.if %2 {
      %cst_31 = arith.constant 0.000000e+00 : f32
      %42 = vector.broadcast %cst_31 : f32 to vector<1x8x128xf32>
      %c0_32 = arith.constant 0 : index
      %c0_33 = arith.constant 0 : index
      %c0_34 = arith.constant 0 : index
      %43 = vector.load %arg4[%c0_32, %c0_33, %c0_34] : memref<1x8x128xf32, #tpu.memory_space<vmem>>, vector<1x8x128xf32>
      tpu.vector_store %arg4[%c0_32, %c0_33, %c0_34], %42 {strides = array<i32>} : memref<1x8x128xf32, #tpu.memory_space<vmem>>, vector<1x8x128xf32>,
      %cst_35 = arith.constant 0.000000e+00 : f32
      %44 = vector.broadcast %cst_35 : f32 to vector<1x8x128xf32>
      %c0_36 = arith.constant 0 : index
      %c0_37 = arith.constant 0 : index
      %c0_38 = arith.constant 0 : index
      %45 = vector.load %arg5[%c0_36, %c0_37, %c0_38] : memref<1x8x128xf32, #tpu.memory_space<vmem>>, vector<1x8x128xf32>
      tpu.vector_store %arg5[%c0_36, %c0_37, %c0_38], %44 {strides = array<i32>} : memref<1x8x128xf32, #tpu.memory_space<vmem>>, vector<1x8x128xf32>,
      %cst_39 = arith.constant 0.000000e+00 : f32
      %46 = vector.broadcast %cst_39 : f32 to vector<1x8x128xf32>
      %c0_40 = arith.constant 0 : index
      %c0_41 = arith.constant 0 : index
      %c0_42 = arith.constant 0 : index
      %47 = vector.load %arg6[%c0_40, %c0_41, %c0_42] : memref<1x8x128xf32, #tpu.memory_space<vmem>>, vector<1x8x128xf32>
      tpu.vector_store %arg6[%c0_40, %c0_41, %c0_42], %46 {strides = array<i32>} : memref<1x8x128xf32, #tpu.memory_space<vmem>>, vector<1x8x128xf32>,
    } else {
    }
    %c0 = arith.constant 0 : index
    %c0_1 = arith.constant 0 : index
    %3 = vector.load %arg2[%c0, %c0_1] : memref<8x128xf32, #tpu.memory_space<vmem>>, vector<8x128xf32>
    %c0_2 = arith.constant 0 : index
    %c0_3 = arith.constant 0 : index
    %4 = vector.load %arg3[%c0_2, %c0_3] : memref<8x128xf32, #tpu.memory_space<vmem>>, vector<8x128xf32>
    %cst = arith.constant 0.000000e+00 : f32
    %5 = vector.broadcast %cst : f32 to vector<8x128xf32>
    %6 = arith.subf %5, %3 : vector<8x128xf32>
    %7 = math.exp %6 : vector<8x128xf32>
    %cst_4 = arith.constant 1.000000e+00 : f32
    %8 = vector.broadcast %cst_4 : f32 to vector<8x128xf32>
    %9 = arith.addf %8, %7 : vector<8x128xf32>
    %cst_5 = arith.constant 1.000000e+00 : f32
    %10 = vector.broadcast %cst_5 : f32 to vector<8x128xf32>
    %11 = arith.divf %10, %9 : vector<8x128xf32>
    %cst_6 = arith.constant 1.000000e+00 : f32
    %12 = vector.broadcast %cst_6 : f32 to vector<8x128xf32>
    %13 = arith.subf %12, %11 : vector<8x128xf32>
    %cst_7 = arith.constant 1.000000e-32 : f32
    %14 = vector.broadcast %cst_7 : f32 to vector<8x128xf32>
    %15 = arith.addf %11, %14 : vector<8x128xf32>
    %16 = math.log %15 : vector<8x128xf32>
    %cst_8 = arith.constant 1.000000e-32 : f32
    %17 = vector.broadcast %cst_8 : f32 to vector<8x128xf32>
    %18 = arith.addf %13, %17 : vector<8x128xf32>
    %19 = math.log %18 : vector<8x128xf32>
    %20 = arith.mulf %4, %16 : vector<8x128xf32>
    %cst_9 = arith.constant 1.000000e+00 : f32
    %21 = vector.broadcast %cst_9 : f32 to vector<8x128xf32>
    %22 = arith.subf %21, %4 : vector<8x128xf32>
    %23 = arith.mulf %22, %19 : vector<8x128xf32>
    %c0_10 = arith.constant 0 : index
    %c0_11 = arith.constant 0 : index
    %c0_12 = arith.constant 0 : index
    %24 = vector.load %arg4[%c0_10, %c0_11, %c0_12] : memref<1x8x128xf32, #tpu.memory_space<vmem>>, vector<1x8x128xf32>
    %25 = vector.shape_cast %20 : vector<8x128xf32> to vector<1x8x128xf32>
    %cst_13 = arith.constant dense<0.000000e+00> : vector<8x128xf32>
    %26 = vector.multi_reduction <add>, %25, %cst_13 [0] : vector<1x8x128xf32> to vector<8x128xf32>
    %27 = vector.shape_cast %26 : vector<8x128xf32> to vector<1x8x128xf32>
    %28 = arith.addf %24, %27 : vector<1x8x128xf32>
    %c0_14 = arith.constant 0 : index
    %c0_15 = arith.constant 0 : index
    %c0_16 = arith.constant 0 : index
    %29 = vector.load %arg4[%c0_14, %c0_15, %c0_16] : memref<1x8x128xf32, #tpu.memory_space<vmem>>, vector<1x8x128xf32>
    tpu.vector_store %arg4[%c0_14, %c0_15, %c0_16], %28 {strides = array<i32>} : memref<1x8x128xf32, #tpu.memory_space<vmem>>, vector<1x8x128xf32>,
    %c0_17 = arith.constant 0 : index
    %c0_18 = arith.constant 0 : index
    %c0_19 = arith.constant 0 : index
    %30 = vector.load %arg5[%c0_17, %c0_18, %c0_19] : memref<1x8x128xf32, #tpu.memory_space<vmem>>, vector<1x8x128xf32>
    %31 = vector.shape_cast %23 : vector<8x128xf32> to vector<1x8x128xf32>
    %cst_20 = arith.constant dense<0.000000e+00> : vector<8x128xf32>
    %32 = vector.multi_reduction <add>, %31, %cst_20 [0] : vector<1x8x128xf32> to vector<8x128xf32>
    %33 = vector.shape_cast %32 : vector<8x128xf32> to vector<1x8x128xf32>
    %34 = arith.addf %30, %33 : vector<1x8x128xf32>
    %c0_21 = arith.constant 0 : index
    %c0_22 = arith.constant 0 : index
    %c0_23 = arith.constant 0 : index
    %35 = vector.load %arg5[%c0_21, %c0_22, %c0_23] : memref<1x8x128xf32, #tpu.memory_space<vmem>>, vector<1x8x128xf32>
    tpu.vector_store %arg5[%c0_21, %c0_22, %c0_23], %34 {strides = array<i32>} : memref<1x8x128xf32, #tpu.memory_space<vmem>>, vector<1x8x128xf32>,
    %c0_24 = arith.constant 0 : index
    %c0_25 = arith.constant 0 : index
    %c0_26 = arith.constant 0 : index
    %36 = vector.load %arg6[%c0_24, %c0_25, %c0_26] : memref<1x8x128xf32, #tpu.memory_space<vmem>>, vector<1x8x128xf32>
    %37 = vector.shape_cast %4 : vector<8x128xf32> to vector<1x8x128xf32>
    %cst_27 = arith.constant dense<0.000000e+00> : vector<8x128xf32>
    %38 = vector.multi_reduction <add>, %37, %cst_27 [0] : vector<1x8x128xf32> to vector<8x128xf32>
    %39 = vector.shape_cast %38 : vector<8x128xf32> to vector<1x8x128xf32>
    %40 = arith.addf %36, %39 : vector<1x8x128xf32>
    %c0_28 = arith.constant 0 : index
    %c0_29 = arith.constant 0 : index
    %c0_30 = arith.constant 0 : index
    %41 = vector.load %arg6[%c0_28, %c0_29, %c0_30] : memref<1x8x128xf32, #tpu.memory_space<vmem>>, vector<1x8x128xf32>
    tpu.vector_store %arg6[%c0_28, %c0_29, %c0_30], %40 {strides = array<i32>} : memref<1x8x128xf32, #tpu.memory_space<vmem>>, vector<1x8x128xf32>,
    return
  }
  func.func @transform_0(%arg0: i32, %arg1: i32) -> (i32, i32) {
    %c1_i32 = arith.constant 1 : i32
    %0 = arith.muli %arg0, %c1_i32 : i32
    %1 = arith.addi %0, %arg1 : i32
    %c0_i32 = arith.constant 0 : i32
    %c0_i32_0 = arith.constant 0 : i32
    return %1, %c0_i32 : i32, i32
  }
  func.func @transform_1(%arg0: i32, %arg1: i32) -> (i32, i32) {
    %c1_i32 = arith.constant 1 : i32
    %0 = arith.muli %arg0, %c1_i32 : i32
    %1 = arith.addi %0, %arg1 : i32
    %c0_i32 = arith.constant 0 : i32
    %c0_i32_0 = arith.constant 0 : i32
    return %1, %c0_i32 : i32, i32
  }
  func.func @transform_2(%arg0: i32, %arg1: i32) -> (i32, i32, i32) {
    %c0_i32 = arith.constant 0 : i32
    %c0_i32_0 = arith.constant 0 : i32
    %c0_i32_1 = arith.constant 0 : i32
    return %arg0, %c0_i32, %c0_i32_0 : i32, i32, i32
  }
  func.func @transform_3(%arg0: i32, %arg1: i32) -> (i32, i32, i32) {
    %c0_i32 = arith.constant 0 : i32
    %c0_i32_0 = arith.constant 0 : i32
    %c0_i32_1 = arith.constant 0 : i32
    return %arg0, %c0_i32, %c0_i32_0 : i32, i32, i32
  }
  func.func @transform_4(%arg0: i32, %arg1: i32) -> (i32, i32, i32) {
    %c0_i32 = arith.constant 0 : i32
    %c0_i32_0 = arith.constant 0 : i32
    %c0_i32_1 = arith.constant 0 : i32
    return %arg0, %c0_i32, %c0_i32_0 : i32, i32, i32
  }
}

</mosaic_0001>

<bundles_post_ra>
// kernel: tpu_custom_call.1
= control target key start
LH: loop header
LB: loop body
LE: loop exit
PB: predicated region body
PF: predicated region fallthrough
CT: control target
= control target key end

     0   :  { %10 = vsyncpa [#allocation3], 0  ;;  %s1105_s0 = inlined_call_operand.hbm [shape: f32[16,128], index: 0, kind: input, shape index: {}]   ;;  %s1106_s1 = inlined_call_operand.hbm [shape: f32[16,128], index: 1, kind: input, shape index: {}]   ;;  %s1107_s2 = inlined_call_operand.hbm [shape: f32[2,8,128], index: 2, kind: output, shape index: {0}]   ;;  %s1108_s3 = inlined_call_operand.hbm [shape: f32[2,8,128], index: 3, kind: output, shape index: {1}]   ;;  %s1109_s4 = inlined_call_operand.hbm [shape: f32[2,8,128], index: 4, kind: output, shape index: {2}]  }
   0x1   :  { %12 = vsyncpa [#allocation3 + $0x1], 0 }
   0x2   :  { %13 = vsyncpa [#allocation6], 0 }
   0x3   :  { %15 = vsyncpa [#allocation6 + $0x1], 0 }
   0x4   :  { %16 = vsyncpa [#allocation4], 0 }
   0x5   :  { %18 = vsyncpa [#allocation4 + $0x1], 0 }
   0x6   :  { %19 = vsyncpa [#allocation9], 0 }
   0x7   :  { %21 = vsyncpa [#allocation9 + $0x1], 0  ;;  %s903_s15 = smov 0   ;;  %s905_s16 = smov 0  }
   0x8   :  { %s907_s17 = smov 0   ;;  %s909_s18 = smov 0  }
   0x9   :  { %s911_s19 = smov 0   ;;  %s913_s20 = smov 0  }
   0xa LB: > { %1113 = sst [smem:[#allocation15_spill]] %s872_s19  ;;  %s934_s21 = sadd.s32 4294967295, %s876_s20   ;;  %s876_s20 = sphi %s913_s20, %s27_s20   ;;  %s872_s19 = sphi %s911_s19, %s1121_s19   ;;  %s868_s18 = sphi %s909_s18, %s1120_s18   ;;  %s864_s17 = sphi %s907_s17, %s1124_s17   ;;  %s860_s16 = sphi %s905_s16, %s1123_s16   ;;  %s856_s15 = sphi %s903_s15, %s1122_s15  }
   0xb   : > { %s1110_s22 = sadd.s32 4294967294, %s876_s20   ;;  %s39_s23 = sadd.s32 1, %s872_s19 }
   0xc   : > { %s48_s24 = sadd.s32 1, %s864_s17  ;;  %p41_p0 = scmp.ge.s32.totalorder %s39_s23, 2 }
   0xd   : > { %p55_p1 = scmp.ne.s32.totalorder %s864_s17, %s860_s16  ;;  %p56_p2 = scmp.eq.s32.totalorder %s876_s20, 0 }
   0xe   : > { %p61_p3 = scmp.ne.s32.totalorder %s860_s16, %s856_s15  ;;  %s1126_s23 = smov (%p41_p0, %s39_s23), 0 }
   0xf   : > { %1114 = sst [smem:[#allocation16_spill]] %s1126_s23  ;;  %p946_p4 = por %p56_p2, %p55_p1 }
  0x10   : > { %p62_p5 = scmp.eq.s32.totalorder %s934_s21, 0  ;;  %s45_s26 = ssub.s32 %s872_s19, %s1126_s23 }
  0x11   : > { %p113_p6 = scmp.eq.s32.totalorder %s934_s21, 1  ;;  %p46_p7 = scmp.eq.s32.totalorder %s45_s26, 0 }
  0x12   : > { %p954_p8 = por %p62_p5, %p61_p3  ;;  %p119_p10 = scmp.eq.s32.totalorder %s1110_s22, 1 }
  0x13   : > { %p958_p9 = por %p113_p6, %p55_p1  ;;  %p565_p12 = scmp.ge.s32.totalorder %s876_s20, 2 }
  0x14   : > { %s965_s29 = scalar_select %p46_p7, %s864_s17, %s48_s24  }
  0x15   : > { %p967_p11 = por %p119_p10, %p61_p3  ;;  %p611_p13 = scmp.lt.s32.totalorder %s876_s20, 2 }
  0x16   : > { %s191_s5 = sand.u32 1, %s864_s17   ;;  %s567_s7 = sshll.u32 %s872_s19, 3 }
  0x17   : > { %s566_s6 = sshll.u32 %s191_s5, 3  ;;  %s200_s10 = scalar_lea.hbm %s1105_s0, %s567_s7 }
  0x18   : > { %s195_s11 = scalar_lea.vmem [#allocation2], %s566_s6  ;;  %s202_s13 = sshll.u32 %s200_s10, 4  ;;  %s203_s13 = int_to_ptr.hbm [resolvable:$true] %s202_s13 }
  0x19   : > { %s204_s12 = sshll.u32 %s195_s11, 4  ;;  %p595_p0 = pnand %p611_p13, %p946_p4  ;;  %s205_s12 = int_to_ptr.vmem [resolvable:$true] %s204_s12 }
  0x1a   : > { %p570_p1 = scmp.ge.s32.totalorder %s876_s20, 1  ;;  %p229_p2 = scmp.lt.s32.totalorder %s876_s20, 3 }
  0x1b   : > { %s192_s14 = scalar_lea.sflag [#allocation3], %s191_s5  ;;  %s220_s22 = scalar_lea.hbm %s1106_s1, %s567_s7 }
  0x1c   : > { %597 = dma.hbm_to_vmem [thread:$0]  (!%p595_p0), %s203_s13, 128, %s205_s12, %s192_s14  }
  0x1d   : > { %p230_p3 = pnand %p570_p1, %p229_p2  ;;  %s215_s23 = scalar_lea.vmem [#allocation5], %s566_s6 }
  0x1e   : > { %s224_s19 = sshll.u32 %s215_s23, 4  ;;  %s222_s8 = sshll.u32 %s220_s22, 4  ;;  %s225_s19 = int_to_ptr.vmem [resolvable:$true] %s224_s19  ;;  %s223_s8 = int_to_ptr.hbm [resolvable:$true] %s222_s8 }
  0x1f   : > { %s212_s9 = scalar_lea.sflag [#allocation6], %s191_s5  ;;  %233 = sbr.rel (%p230_p3) target bundleno = 110 (0x6e), region = 28 }
  0x20   : > { %600 = dma.hbm_to_vmem [thread:$0]  (!%p595_p0), %s223_s8, 128, %s225_s19, %s212_s9  }
  0x21   : > { %s986_s25 = sand.u32 (!%p230_p3), 1, %s860_s16  }
  0x22   : > { %s989_s10 = sshll.u32 (!%p230_p3), %s986_s25, 3  ;;  %s236_s11 = scalar_lea.sflag (!%p230_p3), [#allocation3], %s986_s25 }
  0x23   : > { %s239_s12 = scalar_lea.vmem (!%p230_p3), [#allocation2], %s989_s10 }
  0x24   : > { %839 = dma.done.wait (%p954_p8), %s236_s11, 128  }
  0x25   : > { %841 = vsyncadd (%p954_p8), %s236_s11, 4294967168  ;;  %s246_s19 = scalar_lea.sflag [#allocation6], %s986_s25  ;;  %s249_s22 = scalar_lea.vmem [#allocation5], %s989_s10 }
  0x26   : > { %843 = dma.done.wait (%p954_p8), %s246_s19, 128  }
  0x27   : > { %845 = vsyncadd (%p954_p8), %s246_s19, 4294967168  ;;  %v299_v0 = vld [vmem:[%s239_s12] sm:$0xff]  ;;  %v300_v5 = vld [vmem:[%s249_s22] sm:$0xff]  ;;  %s289_s23 = scalar_lea.vmem [#allocation10], %s989_s10  ;;  %s579_s27 = sshll.u32 %s868_s18, 3 }
  0x28   : > { %v301_v1 = vsub.f32 0.0, %v299_v0  ;;  %341 = vst [vmem:[%s289_s23] sm:$0xff] %v300_v5  ;;  %s347_s5 = sand.u32 1, %s934_s21   ;;  %s363_s13 = scalar_lea.hbm %s1107_s2, %s579_s27  ;;  %v328_v20 = vsub.f32 1.0, %v300_v5 }
  0x29   : > { %s1009_s14 = sshll.u32 %s289_s23, 4  ;;  %s377_s8 = scalar_lea.hbm %s1108_s3, %s579_s27  ;;  %s394_s14 = int_to_ptr.vmem [resolvable:$true] %s1009_s14 }
  0x2a   : > { %v302_v2 = vmul.f32 1.442695, %v301_v1  ;;  %s391_s12 = scalar_lea.hbm %s1109_s4, %s579_s27  ;;  %s275_s18 = scalar_lea.vmem [#allocation7], %s989_s10 }
  0x2b   : > { %s1018_s19 = sshll.u32 %s275_s18, 4  ;;  %s1020_s22 = sshll.u32 %s363_s13, 4  ;;  %s366_s19 = int_to_ptr.vmem [resolvable:$true] %s1018_s19  ;;  %s368_s22 = int_to_ptr.hbm [resolvable:$true] %s1020_s22 }
  0x2c   : > { %662 = vpow2.f32 %v302_v2  ;;  %s282_s23 = scalar_lea.vmem [#allocation8], %s989_s10  ;;  %s1025_s7 = sshll.u32 %s377_s8, 4  ;;  %s382_s7 = int_to_ptr.hbm [resolvable:$true] %s1025_s7 }
  0x2d   : > { %s1023_s6 = sshll.u32 %s282_s23, 4  ;;  %s1027_s27 = sshll.u32 %s391_s12, 4  ;;  %s380_s6 = int_to_ptr.vmem [resolvable:$true] %s1023_s6  ;;  %s396_s27 = int_to_ptr.hbm [resolvable:$true] %s1027_s27 }
  0x2e   : > { %s343_s13 = scalar_lea.sflag [#allocation4], %s986_s25  ;;  %s744_s10 = sshra.s32 %s368_s22, 4  ;;  %s745_s10 = int_to_ptr.hbm [resolvable:$true] %s744_s10 }
  0x2f   : > { %s746_s24 = scalar_lea.hbm %s745_s10, 8  ;;  %s750_s9 = scalar_lea.hbm %s1107_s2, 16 }
  0x30   : > { %p747_p4 = scmp.ne.s32.totalorder %s745_s10, %s746_s24  ;;  %p751_p7 = scmp.lt.s32.totalorder %s745_s10, %s1107_s2 }
  0x31   : > { %p752_p8 = scmp.lt.s32.totalorder %s750_s9, %s746_s24 }
  0x32   : > { %v663_v3 = vpop.eup %662  ;;  %p748_p5 = pnand %p747_p4, %p958_p9 }
  0x33   : > { %v304_v4 = vadd.f32 1.0, %v663_v3  ;;  %p753_p10 = por %p752_p8, %p751_p7 }
  0x34   : > { %p749_p6 = pneg %p748_p5 }
  0x35   : > { %664 = vrcp.f32 %v304_v4  ;;  %v316_v8 = vand.u32 2147483648, %v304_v4  ;;  %vm310_vm0 = vweird.f32 %v304_v4  ;;  %v314_v10 = vand.u32 2147483647, %v304_v4 }
  0x36   : > { %p754_p13 = pnand %p753_p10, %p749_p6 }
  0x37   : > { %v317_v12 = vor.u32 1.1754944e-38, %v316_v8  ;;  %vm315_vm3 = vcmp.eq.f32.partialorder %v314_v10, 8.507059e+37 }
  0x3b   : > { %v665_v6 = vpop.eup %664 }
  0x3c   : > { %v306_v7 = vmul.f32 %v665_v6, %v304_v4  ;;  %vm311_vm1 = vweird.f32 %v665_v6 }
  0x3d   : > { %vm312_vm2 = vmor %vm310_vm0, %vm311_vm1 }
  0x3e   : > { %v307_v9 = vsub.f32 1.0, %v306_v7 }
  0x40   : > { %v308_v11 = vmul.f32 %v665_v6, %v307_v9 }
  0x42   : > { %v309_v13 = vadd.f32 %v665_v6, %v308_v11 }
  0x44   : > { %v313_v14 = vsel %vm312_vm2, %v665_v6, %v309_v13 }
  0x45   : > { %v318_v15 = vsel %vm315_vm3, %v317_v12, %v313_v14 }
  0x46   : > { %v320_v16 = vsub.f32 1.0, %v318_v15  ;;  %v321_v17 = vadd.f32 1e-32, %v318_v15 }
  0x48   : > { %v324_v18 = vadd.f32 1e-32, %v320_v16  ;;  %666 = vlog2.f32 %v321_v17 }
  0x4a   : > { %668 = vlog2.f32 %v324_v18 }
  0x4e   : > { %v667_v19 = vpop.eup %666 }
  0x4f   : > { %v323_v21 = vmul.f32 0.6931472, %v667_v19 }
  0x50   : > { %v669_v22 = vpop.eup %668 }
  0x51   : > { %v326_v23 = vmul.f32 0.6931472, %v669_v22  ;;  %v327_v24 = vmul.f32 %v323_v21, %v300_v5 }
  0x53   : > { %v329_v25 = vmul.f32 %v328_v20, %v326_v23  ;;  %333 = vst [vmem:[%s275_s18] sm:$0xff] %v327_v24 }
  0x54   : > { %757 = shalt.err (!%p754_p13)
}
  0x55   : > { %588 = dma.vmem_to_hbm [thread:$0]  (%p958_p9), %s366_s19, 128, %s368_s22, %s343_s13   ;;  %337 = vst [vmem:[%s282_s23] sm:$0xff] %v329_v25 }
  0x56   : > { %s348_s25 = scalar_lea.sflag [#allocation9], %s347_s5  ;;  %s772_s18 = sshra.s32 %s382_s7, 4  ;;  %s773_s18 = int_to_ptr.hbm [resolvable:$true] %s772_s18 }
  0x57   : > { %s774_s26 = scalar_lea.hbm %s773_s18, 8  ;;  %s778_s8 = scalar_lea.hbm %s1108_s3, 16 }
  0x58   : > { %p775_p0 = scmp.ne.s32.totalorder %s773_s18, %s774_s26  ;;  %p779_p3 = scmp.lt.s32.totalorder %s773_s18, %s1108_s3 }
  0x59   : > { %p780_p4 = scmp.lt.s32.totalorder %s778_s8, %s774_s26 }
  0x5a   : > { %p776_p1 = pnand %p775_p0, %p958_p9 }
  0x5b   : > { %p781_p5 = por %p780_p4, %p779_p3 }
  0x5c   : > { %p777_p2 = pneg %p776_p1 }
  0x5e   : > { %p782_p6 = pnand %p781_p5, %p777_p2 }
  0x60   : > { %785 = shalt.err (!%p782_p6)
}
  0x61   : > { %589 = dma.vmem_to_hbm [thread:$0]  (%p958_p9), %s380_s6, 128, %s382_s7, %s348_s25  }
  0x62   : > { %s800_s21 = sshra.s32 %s396_s27, 4  ;;  %s806_s23 = scalar_lea.hbm %s1109_s4, 16  ;;  %s801_s21 = int_to_ptr.hbm [resolvable:$true] %s800_s21 }
  0x63   : > { %s802_s5 = scalar_lea.hbm %s801_s21, 8  ;;  %p807_p13 = scmp.lt.s32.totalorder %s801_s21, %s1109_s4 }
  0x64   : > { %p803_p7 = scmp.ne.s32.totalorder %s801_s21, %s802_s5  ;;  %p808_p0 = scmp.lt.s32.totalorder %s806_s23, %s802_s5 }
  0x66   : > { %p804_p8 = pnand %p803_p7, %p958_p9  ;;  %p809_p1 = por %p808_p0, %p807_p13 }
  0x68   : > { %p805_p10 = pneg %p804_p8 }
  0x6a   : > { %p810_p2 = pnand %p809_p1, %p805_p10 }
  0x6c   : > { %813 = shalt.err (!%p810_p2)
}
  0x6d   : > { %590 = dma.vmem_to_hbm [thread:$0]  (%p958_p9), %s394_s14, 128, %s396_s27, %s348_s25  }
  0x6e PF: > { %s407_s6 = sand.u32 1, %s856_s15   ;;  %p602_p3 = pnand %p565_p12, %p967_p11 }
  0x6f   : > { %s408_s7 = scalar_lea.sflag [#allocation4], %s407_s6 }
  0x70   : > { %p603_p4 = pneg %p602_p3 }
  0x72   : > { %847 = dma.done.wait (%p603_p4), %s408_s7, 128  }
  0x73   : > { %849 = vsyncadd (%p603_p4), %s408_s7, 4294967168  ;;  %s1119_s18 = sadd.s32 4294967294, %s876_s20  }
  0x74   : > { %s417_s28 = sand.u32 1, %s1119_s18  }
  0x75   : > { %s418_s26 = scalar_lea.sflag [#allocation9], %s417_s28 }
  0x76   : > { %851 = dma.done.wait (%p603_p4), %s418_s26, 256  }
  0x77   : > { %853 = vsyncadd (%p603_p4), %s418_s26, 4294967040  ;;  %s27_s20 = sadd.s32 1, %s876_s20   ;;  %s1120_s18 = sld [smem:[#allocation15_spill]] }
  0x78   : > { %p24_p9 = scmp.ge.s32.totalorder %s27_s20, 4   ;;  %s1121_s19 = sld [smem:[#allocation16_spill]] }
  0x79   : > { %s1122_s15 = smov %s860_s16  ;;  %s1123_s16 = smov %s864_s17 }
  0x7a   : > { %s1124_s17 = smov %s965_s29  ;;  %26 = sbr.rel (!%p24_p9) target bundleno = 10 (0xa), region = 122 }
  0x7f   :  { %434 = vsyncpa [#allocation3], 1 }
  0x80   :  { %436 = vsyncpa [#allocation3 + $0x1], 1 }
  0x81   :  { %437 = vsyncpa [#allocation6], 1 }
  0x82   :  { %439 = vsyncpa [#allocation6 + $0x1], 1 }
  0x83   :  { %440 = vsyncpa [#allocation4], 1 }
  0x84   :  { %442 = vsyncpa [#allocation4 + $0x1], 1 }
  0x85   :  { %443 = vsyncpa [#allocation9], 1 }
  0x86   :  { %445 = vsyncpa [#allocation9 + $0x1], 1 }

</bundles_post_ra>
